<compile_context>
chip_gen: v7x
topology: tpu7x:2x2x1
jax: 0.10.0
libtpu: 0.0.40
codegen_flags: <defaults>
</compile_context>

<pallas_src>
import functools

import jax
import jax.numpy as jnp
from jax.experimental import pallas as pl
from jax.experimental.pallas import tpu as pltpu


_VMEM = pl.BlockSpec(memory_space=pltpu.MemorySpace.VMEM)


def _elu(x):
    # clamp exp argument so the unselected branch never overflows to inf
    return jnp.where(x > 0, x, jnp.exp(jnp.minimum(x, 0.0)) - 1.0)


def _pick_tile(n, pref=256):
    """Row/col tile for the N x N attention.  Full extent for small graphs;
    256 otherwise.  TODO(synk): re-derive per generation (64 MiB VMEM on v7x)."""
    return pref if (n > pref and n % pref == 0) else n


# ---------------------------------------------------------------------------
# Kernel 1: fused per-head projection   wh_ext = x @ [ W | W@a1 | W@a2 ]
#   accumulate=False : out[h]  = x     @ w_ext[h]       (layer-1 heads)
#   accumulate=True  : out[0] += x3[h] @ w_ext[h]       (layer 2: the head
#                      concat is folded into a head-summed projection)
# ---------------------------------------------------------------------------
def _proj_kernel(x_ref, w_ref, out_ref, *, accumulate):
    prod = jnp.dot(x_ref[...].astype(jnp.bfloat16),
                   w_ref[...].astype(jnp.bfloat16),
                   preferred_element_type=jnp.float32)
    if accumulate:
        @pl.when(pl.program_id(0) == 0)
        def _():
            out_ref[...] = jnp.zeros_like(out_ref)
        out_ref[...] += prod
    else:
        out_ref[...] = prod


def project(x3, w_ext, *, accumulate):
    """x3: [Hx, N, Fin] (Hx==1 broadcasts over heads), w_ext: [H, Fin, Fext]."""
    hx, n, fin = x3.shape
    hw, fin_w, fext = w_ext.shape
    assert fin == fin_w and (hx == hw or hx == 1)
    hout = 1 if accumulate else hw
    x_map = (lambda h: (0, 0, 0)) if hx == 1 else (lambda h: (h, 0, 0))
    o_map = (lambda h: (0, 0, 0)) if accumulate else (lambda h: (h, 0, 0))
    return pl.pallas_call(
        functools.partial(_proj_kernel, accumulate=accumulate),
        out_shape=jax.ShapeDtypeStruct((hout, n, fext), jnp.float32),
        grid_spec=pltpu.PrefetchScalarGridSpec(
            num_scalar_prefetch=0,
            grid=(hw,),
            in_specs=[pl.BlockSpec((None, n, fin), x_map),
                      pl.BlockSpec((None, fin, fext), lambda h: (h, 0, 0))],
            out_specs=pl.BlockSpec((None, n, fext), o_map)),
        compiler_params=pltpu.CompilerParams(
            dimension_semantics=(("arbitrary",) if accumulate else ("parallel",))),
    )(x3, w_ext)


# ---------------------------------------------------------------------------
# Kernel 2: fused multi-head relational attention, flash-style online softmax.
# ---------------------------------------------------------------------------
def _attn_kernel(rel_sc_ref,     # SMEM [H, nrel]      (scalar prefetch)
                 whq_ref,        # VMEM [tq, fout+2]   rows:  [Wh_i | f1 | f2]
                 whk_ref,        # VMEM [tk, fout+2]   cols
                 f2t_ref,        # VMEM [1, tk]        f2_j = a2 . Wh_j  (row)
                 rid_ref,        # VMEM [tq, tk] i32   relation id, -1 = no edge
                 out_ref,        # VMEM [tq, fout]
                 m_sc, l_sc, acc_sc,
                 *, alpha, concat, fout, nrel):
    h = pl.program_id(0)
    j = pl.program_id(2)

    @pl.when(j == 0)
    def _():
        m_sc[...] = jnp.full_like(m_sc, -jnp.inf)
        l_sc[...] = jnp.zeros_like(l_sc)
        acc_sc[...] = jnp.zeros_like(acc_sc)

    whq = whq_ref[...]
    f1 = whq[:, fout:fout + 1]                         # [tq, 1]  a1 . Wh_i
    whk = whk_ref[...][:, :fout]                       # [tk, fout]
    f2t = f2t_ref[...]                                 # [1, tk]  a2 . Wh_j

    # in-kernel relation "gather": nrel compare+select passes on the VPU
    rid = rid_ref[...]
    relsc = jnp.zeros(rid.shape, jnp.float32)
    for r in range(nrel):                              # static unroll
        relsc = jnp.where(rid == r, rel_sc_ref[h, r], relsc)

    e = f1 + f2t + relsc
    e = jnp.where(e > 0, e, alpha * e)                 # LeakyReLU(alpha)
    e = jnp.where(rid >= 0, e, -9e15)                  # mask non-edges

    # online softmax across column tiles
    m_new = jnp.maximum(m_sc[...], jnp.max(e, axis=1, keepdims=True))
    corr = jnp.exp(m_sc[...] - m_new)
    p = jnp.exp(e - m_new)
    l_sc[...] = corr * l_sc[...] + jnp.sum(p, axis=1, keepdims=True)
    acc_sc[...] = corr * acc_sc[...] + jnp.dot(
        p.astype(jnp.bfloat16), whk.astype(jnp.bfloat16),
        preferred_element_type=jnp.float32)
    m_sc[...] = m_new

    @pl.when(j == pl.num_programs(2) - 1)
    def _():
        res = acc_sc[...] * pl.reciprocal(l_sc[...], approx=True)
        if concat:
            res = _elu(res)
        out_ref[...] = res


def attention(wh_ext, f2t, rel_scalar, rid_masked, *, fout, alpha, concat):
    nh, n, fext = wh_ext.shape
    nrel = rel_scalar.shape[1]
    assert fext == fout + 2
    tq = _pick_tile(n)
    tk = _pick_tile(n)
    assert n % tq == 0 and n % tk == 0
    ni, nj = n // tq, n // tk

    kernel = functools.partial(_attn_kernel, alpha=alpha, concat=concat,
                               fout=fout, nrel=nrel)
    flops = nh * n * n * (2 * fout + 12)
    bytes_accessed = 4 * nh * n * (n + fext * (1 + nj) + fout + nj)
    return pl.pallas_call(
        kernel,
        out_shape=jax.ShapeDtypeStruct((nh, n, fout), jnp.float32),
        grid_spec=pltpu.PrefetchScalarGridSpec(
            num_scalar_prefetch=1,
            grid=(nh, ni, nj),
            in_specs=[
                pl.BlockSpec((None, tq, fext), lambda h, i, j, rs: (h, i, 0)),
                pl.BlockSpec((None, tk, fext), lambda h, i, j, rs: (h, j, 0)),
                pl.BlockSpec((None, 1, tk), lambda h, i, j, rs: (h, 0, j)),
                pl.BlockSpec((tq, tk), lambda h, i, j, rs: (i, j)),
            ],
            out_specs=pl.BlockSpec((None, tq, fout),
                                   lambda h, i, j, rs: (h, i, 0)),
            scratch_shapes=[pltpu.VMEM((tq, 1), jnp.float32),
                            pltpu.VMEM((tq, 1), jnp.float32),
                            pltpu.VMEM((tq, fout), jnp.float32)]),
        compiler_params=pltpu.CompilerParams(
            dimension_semantics=("parallel", "parallel", "arbitrary"),
            vmem_limit_bytes=32 * 1024 * 1024),
        cost_estimate=pl.CostEstimate(flops=flops, transcendentals=nh * n * n,
                                      bytes_accessed=bytes_accessed),
    )(rel_scalar, wh_ext, wh_ext, f2t, rid_masked)


# ---------------------------------------------------------------------------
# Kernel 3: linear_att -> ELU -> log_softmax(dim=1)
# ---------------------------------------------------------------------------
def _head_kernel(x_ref, w_ref, b_ref, out_ref):
    z = jnp.dot(x_ref[...].astype(jnp.bfloat16), w_ref[...].astype(jnp.bfloat16),
                preferred_element_type=jnp.float32) + b_ref[...]
    z = _elu(z)
    z = z - jnp.max(z, axis=1, keepdims=True)
    out_ref[...] = z - jnp.log(jnp.sum(jnp.exp(z), axis=1, keepdims=True))


def head(x, w, b):
    n, c = x.shape[0], w.shape[1]
    return pl.pallas_call(
        _head_kernel,
        out_shape=jax.ShapeDtypeStruct((n, c), jnp.float32),
        in_specs=[_VMEM] * 3,
        out_specs=_VMEM,
    )(x, w, b)


# ---------------------------------------------------------------------------
# Parameter initialization (deterministic, xavier-uniform-like, gain=1.414)
# ---------------------------------------------------------------------------
def _xavier(key, shape, gain=1.414):
    fan_in, fan_out = shape[0], shape[-1]
    bound = gain * (6.0 / (fan_in + fan_out)) ** 0.5
    return jax.random.uniform(key, shape, jnp.float32, -bound, bound)


def init_layer_params(key, in_feat, out_feat, rel_dim):
    k = jax.random.split(key, 5)
    return dict(
        W=_xavier(k[0], (in_feat, out_feat)),
        a1=_xavier(k[1], (out_feat, 1)),
        a2=_xavier(k[2], (out_feat, 1)),
        Wr=_xavier(k[3], (rel_dim, out_feat)),
        a3=_xavier(k[4], (out_feat, 1)),
    )


def init_gat_all_params(key, nfeat, nhid, nclass, nheads, rel_dim):
    keys = jax.random.split(key, nheads + 2)
    attentions = [init_layer_params(keys[i], nfeat, nhid, rel_dim)
                  for i in range(nheads)]
    out_att = init_layer_params(keys[nheads], nhid * nheads, nfeat, rel_dim)
    kl = jax.random.split(keys[nheads + 1], 2)
    return dict(attentions=attentions, out_att=out_att,
                linear_W=_xavier(kl[0], (nfeat, nclass), gain=1.0),
                linear_b=jnp.zeros((1, nclass), jnp.float32))


# ---------------------------------------------------------------------------
# Forward pass (tiny prep in plain JAX, hot path in Pallas kernels)
# ---------------------------------------------------------------------------
def _w_extended(p):
    # [Fin, Fout+2] = [ W | W@a1 | W@a2 ]  (folds the a1/a2 matvecs into the MXU pass)
    return jnp.concatenate([p["W"], p["W"] @ p["a1"], p["W"] @ p["a2"]], axis=1)


def _rel_scalars(p, rel):
    # per-relation scalar score  a3 . (rel @ Wr)   -> [nrel]
    return ((rel @ p["Wr"]) @ p["a3"])[:, 0]


def gat_all_forward(params, x, rel, rel_ids, adj, adj_ad=None, *, alpha=0.2):
    # F.dropout -> identity (eval mode); adj_ad unused (see TODO at top).
    nheads = len(params["attentions"])
    nhid = params["attentions"][0]["W"].shape[1]
    nfeat = params["out_att"]["W"].shape[1]

    # relation id per edge, -1 encodes "no edge" (adjacency folded in, int32)
    rid_masked = jnp.where(adj > 0, rel_ids, -1).astype(jnp.int32)

    # ----- layer 1: all attention heads fused into single pallas_calls -----
    w1_ext = jnp.stack([_w_extended(p) for p in params["attentions"]])  # [H,Fin,nhid+2]
    rsc1 = jnp.stack([_rel_scalars(p, rel) for p in params["attentions"]])  # [H,nrel]
    wh1 = project(x[None], w1_ext, accumulate=False)                    # [H,N,nhid+2]
    f2t1 = jnp.swapaxes(wh1[:, :, nhid + 1:nhid + 2], 1, 2)             # [H,1,N]
    h1 = attention(wh1, f2t1, rsc1, rid_masked,
                   fout=nhid, alpha=alpha, concat=True)                 # [H,N,nhid]

    # ----- layer 2 (out_att): head concat folded into head-summed projection -----
    p2 = params["out_att"]
    w2_ext = _w_extended(p2).reshape(nheads, nhid, nfeat + 2)           # [H,nhid,nfeat+2]
    rsc2 = _rel_scalars(p2, rel)[None, :]                               # [1,nrel]
    wh2 = project(h1, w2_ext, accumulate=True)                          # [1,N,nfeat+2]
    f2t2 = jnp.swapaxes(wh2[:, :, nfeat + 1:nfeat + 2], 1, 2)           # [1,1,N]
    h2 = attention(wh2, f2t2, rsc2, rid_masked,
                   fout=nfeat, alpha=alpha, concat=False)[0]            # [N,nfeat]

    # ----- ELU(linear_att(h)) -> log_softmax -----
    return head(h2, params["linear_W"], params["linear_b"])


# ---------------------------------------------------------------------------
# Demo
# ---------------------------------------------------------------------------
if __name__ == "__main__":
    N, NFEAT, NHID, NREL, REL_DIM, NHEADS, NCLASS = 16, 16, 8, 4, 8, 2, 4
    ALPHA = 0.2

    key = jax.random.PRNGKey(0)
    k_x, k_rel, k_adj, k_adj2, k_rid, k_par = jax.random.split(key, 6)

    x = jax.random.normal(k_x, (N, NFEAT), jnp.float32)
    rel = jax.random.normal(k_rel, (NREL, REL_DIM), jnp.float32)
    # random sparse-ish adjacency with self-loops
    adj = (jax.random.uniform(k_adj, (N, N)) < 0.3).astype(jnp.float32)
    adj = jnp.maximum(adj, jnp.eye(N, dtype=jnp.float32))
    adj_ad = (jax.random.uniform(k_adj2, (N, N)) < 0.3).astype(jnp.float32)
    # dense replacement for rel_dict: relation id per (i, j) edge
    rel_ids = jax.random.randint(k_rid, (N, N), 0, NREL, jnp.int32)

    params = init_gat_all_params(k_par, NFEAT, NHID, NCLASS, NHEADS, REL_DIM)

    out = gat_all_forward(params, x, rel, rel_ids, adj, adj_ad, alpha=ALPHA)
    out = jax.block_until_ready(out)

    assert out.shape == (N, NCLASS)
    # rows of log_softmax must exp-sum to 1
    assert bool(jnp.allclose(jnp.exp(out).sum(axis=1), 1.0, atol=1e-4))
    print("KERNEL_OK")
</pallas_src>

<mosaic_0001>
module attributes {stable_mosaic.version = 11 : i64} {
  func.func @_proj_kernel(%arg0: i32, %arg1: memref<1x16x16xf32, #tpu.memory_space<vmem>>, %arg2: memref<1x16x10xf32, #tpu.memory_space<vmem>>, %arg3: memref<1x16x10xf32, #tpu.memory_space<vmem>>) attributes {dimension_semantics = [#tpu.dimension_semantics<parallel>], iteration_bounds = array<i64: 2>, scalar_prefetch = 0 : i64, scratch_operands = 0 : i64, tpu.core_type = #tpu.core_type<tc>, window_params = [{pipeline_mode = #tpu.pipeline_mode<synchronous>, transform_indices = @transform_0, window_bounds = array<i64: 1, 16, 16>}, {transform_indices = @transform_1, window_bounds = array<i64: 1, 16, 10>}, {transform_indices = @transform_2, window_bounds = array<i64: 1, 16, 10>}]} {
    %c0 = arith.constant 0 : index
    %c0_0 = arith.constant 0 : index
    %c0_1 = arith.constant 0 : index
    %0 = vector.load %arg1[%c0, %c0_0, %c0_1] : memref<1x16x16xf32, #tpu.memory_space<vmem>>, vector<1x16x16xf32>
    %1 = vector.shape_cast %0 : vector<1x16x16xf32> to vector<16x16xf32>
    %2 = arith.truncf %1 : vector<16x16xf32> to vector<16x16xbf16>
    %c0_2 = arith.constant 0 : index
    %c0_3 = arith.constant 0 : index
    %c0_4 = arith.constant 0 : index
    %3 = vector.load %arg2[%c0_2, %c0_3, %c0_4] : memref<1x16x10xf32, #tpu.memory_space<vmem>>, vector<1x16x10xf32>
    %4 = vector.shape_cast %3 : vector<1x16x10xf32> to vector<16x10xf32>
    %5 = arith.truncf %4 : vector<16x10xf32> to vector<16x10xbf16>
    %cst = arith.constant dense<0.000000e+00> : vector<16x10xf32>
    %6 = tpu.matmul %2, %5, %cst {dimension_numbers = #tpu.dot_dimension_numbers<[1], [0], [0], [1], [0, 0, 1, 1], [], []>} : vector<16x16xbf16>, vector<16x10xbf16>, vector<16x10xf32> -> vector<16x10xf32>
    %c0_5 = arith.constant 0 : index
    %c0_6 = arith.constant 0 : index
    %c0_7 = arith.constant 0 : index
    %7 = vector.load %arg3[%c0_5, %c0_6, %c0_7] : memref<1x16x10xf32, #tpu.memory_space<vmem>>, vector<1x16x10xf32>
    %8 = vector.shape_cast %7 : vector<1x16x10xf32> to vector<16x10xf32>
    %9 = vector.shape_cast %6 : vector<16x10xf32> to vector<1x16x10xf32>
    tpu.vector_store %arg3[%c0_5, %c0_6, %c0_7], %9 {strides = array<i32>} : memref<1x16x10xf32, #tpu.memory_space<vmem>>, vector<1x16x10xf32>,
    return
  }
  func.func @transform_0(%arg0: i32) -> (i32, i32, i32) {
    %c0_i32 = arith.constant 0 : i32
    %c0_i32_0 = arith.constant 0 : i32
    %c0_i32_1 = arith.constant 0 : i32
    %c0_i32_2 = arith.constant 0 : i32
    return %c0_i32, %c0_i32_0, %c0_i32_1 : i32, i32, i32
  }
  func.func @transform_1(%arg0: i32) -> (i32, i32, i32) {
    %c0_i32 = arith.constant 0 : i32
    %c0_i32_0 = arith.constant 0 : i32
    %c0_i32_1 = arith.constant 0 : i32
    return %arg0, %c0_i32, %c0_i32_0 : i32, i32, i32
  }
  func.func @transform_2(%arg0: i32) -> (i32, i32, i32) {
    %c0_i32 = arith.constant 0 : i32
    %c0_i32_0 = arith.constant 0 : i32
    %c0_i32_1 = arith.constant 0 : i32
    return %arg0, %c0_i32, %c0_i32_0 : i32, i32, i32
  }
}

</mosaic_0001>

<bundles_post_ra>
// kernel: tpu_custom_call.1
= control target key start
LH: loop header
LB: loop body
LE: loop exit
PB: predicated region body
PF: predicated region fallthrough
CT: control target
= control target key end

     0   :  { %s311_s9 = smov 0   ;;  %s334_s0 = inlined_call_operand.vmem [shape: f32[1,16,16], index: 0, kind: input, shape index: {}]   ;;  %s335_s1 = inlined_call_operand.vmem [shape: f32[2,16,10], index: 1, kind: input, shape index: {}]   ;;  %s336_s2 = inlined_call_operand.vmem [shape: f32[2,16,10], index: 2, kind: output, shape index: {}]  }
   0x1 LB: > { %s254_s10 = sadd.s32 4294967295, %s292_s9   ;;  %p258_p0 = scmp.ge.s32.totalorder %s292_s9, 1  ;;  %s292_s9 = sphi %s311_s9, %s12_s9  }
   0x2   : > { %p112_p1 = scmp.lt.s32.totalorder %s292_s9, 3 }
   0x4   : > { %p113_p2 = pnand %p258_p0, %p112_p1 }
   0x5   : > { %p134_p3 = scmp.lt.s32.totalorder (!%p113_p2), %s254_s10, 1  ;;  %v294_v0 = vmov (!%p113_p2), 0.0   ;;  %vm295_vm0 = vmmov (!%p113_p2), 0   ;;  %v145_v1 = vld [vmem:[%s334_s0] sm:$0xff] (!%p113_p2)  ;;  %v146_v2 = vld [vmem:[%s334_s0 + $0x8] sm:$0xff] (!%p113_p2)  ;;  %vm151_vm1 = vcmask (!%p113_p2), 130048  }
   0x6   : > { %116 = sbr.rel (%p113_p2) target bundleno = 237 (0xed), region = 28  ;;  %270 = vmatprep.subr.bf16.mxu0 (!%p113_p2), %v294_v0  ;;  %272 = vmatprep.mubr.msk.bf16.mxu0 (!%p113_p2), %vm295_vm0, %v294_v0  ;;  %v147_v6 = vpack.c.bf16 (!%p113_p2), %v146_v2, %v145_v1  ;;  %vm196_vm2 = vcmask (!%p113_p2), 80896  }
   0xd   : > { %s338_s10 = smov (!%p134_p3, %s254_s10), 1 }
   0xe   : > { %s266_s11 = sshll.u32 %s338_s10, 4 }
   0xf   : > { %s138_s14 = scalar_lea.vmem %s335_s1, %s266_s11  ;;  %s143_s21 = scalar_lea.vmem %s336_s2, %s266_s11 }
  0x10   : > { %v148_v3 = vld [vmem:[%s138_s14] sm:$0xff]  ;;  %v149_v4 = vld [vmem:[%s138_s14 + $0x8] sm:$0xff] }
  0x11   : > { %v150_v5 = vpack.c.bf16 %v149_v4, %v148_v3 }
  0x13   : > { %271 = vmatpush3.bf16.msra.mxu0 %v150_v5 }
  0x16   : > { %273 = vmatmul.mubr.msk.bf16.vlgmr.msra.gmra.mrb[0].mxu0 %vm151_vm1, %v147_v6 }
  0xe9   : > { %v189_v7 = vpop.f32.mrb[0].mxu0 }
  0xea   : > { %197 = vst.msk [vmem:[%s143_s21] sm:$0xff] %vm196_vm2, %v189_v7  ;;  %v274_v8 = vpop.f32.mrb[1].mxu0 }
  0xeb   : > { %v192_v9 = vpop.f32.mrb[2].mxu0 }
  0xec   : > { %198 = vst.msk [vmem:[%s143_s21 + $0x8] sm:$0xff] %vm196_vm2, %v192_v9  ;;  %v275_v10 = vpop.f32.mrb[3].mxu0 }
  0xed PF: > { %s12_s9 = sadd.s32 1, %s292_s9  }
  0xee   : > { %p9_p4 = scmp.ge.s32.totalorder %s12_s9, 4  }
  0xf0   :  { %11 = sbr.rel (!%p9_p4) target bundleno = 1 (0x1), region = 58 }

</bundles_post_ra>
